<compile_context>
chip_gen: v7x
topology: tpu7x:2x2x1
jax: 0.10.0
libtpu: 0.0.40
codegen_flags: <defaults>
</compile_context>

<pallas_src>
import functools

import jax
import jax.numpy as jnp
from jax.experimental import pallas as pl
from jax.experimental.pallas import tpu as pltpu


def _mha_kernel(q_ref, kv_ref, wq_ref, wkv_ref, wo_ref, bo_ref,
                x_ref, attn_ref, energy_ref, *, n_heads, hidden_dim, inv_scale):
    # q_ref:  (bb, Lq, Dq) f32      kv_ref: (bb, Lk, Din) f32
    # wq_ref: (Dq, hidden) bf16     wkv_ref: (Din, 2*hidden) bf16
    # wo_ref: (hidden, Dq) bf16     bo_ref: (1, Dq) f32
    # x_ref:  (bb, Lq, Dq) f32      attn_ref/energy_ref: (bb, H, Lq, Lk) f32
    bb, Lq, Dq = q_ref.shape
    _, Lk, Din = kv_ref.shape
    H = n_heads
    hd = hidden_dim // H

    # ---- Wide projections: heads live in the lane dimension (2 matmuls total). ----
    q2 = q_ref[...].reshape(bb * Lq, Dq).astype(jnp.bfloat16)     # (bb*Lq, Dq)
    kv2 = kv_ref[...].reshape(bb * Lk, Din).astype(jnp.bfloat16)  # (bb*Lk, Din)

    Q = jnp.dot(q2, wq_ref[...], preferred_element_type=jnp.float32)     # (bb*Lq, hidden)
    KV = jnp.dot(kv2, wkv_ref[...], preferred_element_type=jnp.float32)  # (bb*Lk, 2*hidden)
    K = KV[:, :hidden_dim]
    V = KV[:, hidden_dim:]

    Q3 = Q.reshape(bb, Lq, hidden_dim).astype(jnp.bfloat16)
    K3 = K.reshape(bb, Lk, hidden_dim).astype(jnp.bfloat16)
    V3 = V.reshape(bb, Lk, hidden_dim).astype(jnp.bfloat16)

    # ---- Per-head attention (batched over the batch axis; per-(b,h) matmuls are
    #      inherent to multi-head attention). ----
    ctx_parts = []
    for h in range(H):  # static unroll, H is small
        sl = slice(h * hd, (h + 1) * hd)  # lane slice for head h
        e_h = jnp.einsum('bqd,bkd->bqk', Q3[..., sl], K3[..., sl],
                         preferred_element_type=jnp.float32) * inv_scale  # (bb, Lq, Lk)

        # Numerically stable softmax over the key axis, all f32, exact normalization.
        m_h = jnp.max(e_h, axis=-1, keepdims=True)
        p_h = jnp.exp(e_h - m_h)
        a_h = p_h / jnp.sum(p_h, axis=-1, keepdims=True)

        energy_ref[:, h, :, :] = e_h
        attn_ref[:, h, :, :] = a_h

        # TODO(synk): attention dropout is identity here (eval mode).
        ctx_parts.append(
            jnp.einsum('bqk,bkd->bqd', a_h.astype(jnp.bfloat16), V3[..., sl],
                       preferred_element_type=jnp.float32))               # (bb, Lq, hd)

    # Heads back into the lane dimension -> single output projection.
    ctx = jnp.concatenate(ctx_parts, axis=-1)                             # (bb, Lq, hidden)
    out = jnp.dot(ctx.reshape(bb * Lq, hidden_dim).astype(jnp.bfloat16), wo_ref[...],
                  preferred_element_type=jnp.float32) + bo_ref[...]       # (bb*Lq, Dq)
    x_ref[...] = out.reshape(bb, Lq, Dq).astype(x_ref.dtype)


def prepare_params(params):
    """One-time parameter prep (hoisted out of the per-call hot path).

    Only dtype casts remain: heads are handled as lane slices inside the kernel, so
    no per-head reshape/transpose of the weights is needed at all.
    """
    return {
        "wq": params["wq"].astype(jnp.bfloat16),             # (Dq, hidden)
        "wkv": params["wkv"].astype(jnp.bfloat16),            # (Din, 2*hidden)
        "wo": params["wo"].astype(jnp.bfloat16),               # (hidden, Dq)
        "bo": params["bo"].reshape(1, -1).astype(jnp.float32),  # (1, Dq)
    }


@functools.partial(jax.jit, static_argnames=("n_heads", "batch_block"))
def multi_head_attention(query, key_value, prepped, *, n_heads, batch_block=None):
    """query: (B, Lq, Dq), key_value: (B, Lk, Din). Returns (x, attention, energy)."""
    B, Lq, Dq = query.shape
    _, Lk, Din = key_value.shape
    wq, wkv, wo, bo = prepped["wq"], prepped["wkv"], prepped["wo"], prepped["bo"]
    hidden_dim = wq.shape[1]
    assert hidden_dim % n_heads == 0
    head_dim = hidden_dim // n_heads
    inv_scale = 1.0 / (float(head_dim) ** 0.5)

    # Default: whole batch in one grid step (best for single-TC v5e/v6e at these
    # shapes).  On v7x pass batch_block = B // 2 so each of the 2 TCs gets one step.
    bb = B if batch_block is None else batch_block
    assert B % bb == 0

    kernel = functools.partial(_mha_kernel, n_heads=n_heads,
                               hidden_dim=hidden_dim, inv_scale=inv_scale)

    out_shapes = (
        jax.ShapeDtypeStruct((B, Lq, Dq), jnp.float32),               # x
        jax.ShapeDtypeStruct((B, n_heads, Lq, Lk), jnp.float32),      # attention
        jax.ShapeDtypeStruct((B, n_heads, Lq, Lk), jnp.float32),      # energy
    )

    x, attention, energy = pl.pallas_call(
        kernel,
        out_shape=out_shapes,
        grid=(B // bb,),
        in_specs=[
            pl.BlockSpec((bb, Lq, Dq), lambda b: (b, 0, 0)),
            pl.BlockSpec((bb, Lk, Din), lambda b: (b, 0, 0)),
            pl.BlockSpec((Dq, hidden_dim), lambda b: (0, 0)),
            pl.BlockSpec((Din, 2 * hidden_dim), lambda b: (0, 0)),
            pl.BlockSpec((hidden_dim, Dq), lambda b: (0, 0)),
            pl.BlockSpec((1, Dq), lambda b: (0, 0)),
        ],
        out_specs=(
            pl.BlockSpec((bb, Lq, Dq), lambda b: (b, 0, 0)),
            pl.BlockSpec((bb, n_heads, Lq, Lk), lambda b: (b, 0, 0, 0)),
            pl.BlockSpec((bb, n_heads, Lq, Lk), lambda b: (b, 0, 0, 0)),
        ),
        compiler_params=pltpu.CompilerParams(
            dimension_semantics=("parallel",)),
    )(query, key_value, wq, wkv, wo, bo)

    # TODO(synk): `energy` doubles the (small) output writeback; drop it if callers
    # only need `attention`.
    return x, attention, energy


def init_params(key, input_dim, query_dim, hidden_dim):
    """Deterministic synthetic parameters (PyTorch layout, stored pre-transposed)."""
    k1, k2, k3, k4 = jax.random.split(key, 4)
    wq = jax.random.normal(k1, (query_dim, hidden_dim), jnp.float32) * 0.05
    wkv = jax.random.normal(k2, (input_dim, 2 * hidden_dim), jnp.float32) * 0.05
    wo = jax.random.normal(k3, (hidden_dim, query_dim), jnp.float32) * 0.05
    bo = jax.random.normal(k4, (1, query_dim), jnp.float32) * 0.05
    return {"wq": wq, "wkv": wkv, "wo": wo, "bo": bo}


def reference(query, key_value, params, *, n_heads):
    """Pure-JAX f32 reference mirroring the PyTorch forward (dropout = identity)."""
    B, Lq, Dq = query.shape
    _, Lk, Din = key_value.shape
    hidden = params["wq"].shape[1]
    hd = hidden // n_heads
    Q = query @ params["wq"]
    KV = key_value @ params["wkv"]
    K, V = KV[..., :hidden], KV[..., hidden:]
    Qh = Q.reshape(B, Lq, n_heads, hd).transpose(0, 2, 1, 3)
    Kh = K.reshape(B, Lk, n_heads, hd).transpose(0, 2, 1, 3)
    Vh = V.reshape(B, Lk, n_heads, hd).transpose(0, 2, 1, 3)
    energy = jnp.einsum("bhqd,bhkd->bhqk", Qh, Kh) / jnp.sqrt(jnp.float32(hd))
    attn = jax.nn.softmax(energy, axis=-1)
    x = jnp.einsum("bhqk,bhkd->bhqd", attn, Vh)
    x = x.transpose(0, 2, 1, 3).reshape(B, Lq, hidden)
    x = x @ params["wo"] + params["bo"][0]
    return x, attn, energy


if __name__ == "__main__":
    # Small shapes consistent with the module:
    #   input_dim=16 (key_value features), query_dim=32, hidden_dim=32,
    #   n_heads=4 (head_dim=8), num_latents=Lq=8, kv sequence Lk=16, batch=2.
    B, Lq, Lk = 2, 8, 16
    input_dim, query_dim, hidden_dim, n_heads = 16, 32, 32, 4

    key = jax.random.PRNGKey(0)
    kq, kkv, kp = jax.random.split(key, 3)
    query = jax.random.normal(kq, (B, Lq, query_dim), jnp.float32)
    key_value = jax.random.normal(kkv, (B, Lk, input_dim), jnp.float32)
    params = init_params(kp, input_dim, query_dim, hidden_dim)
    prepped = prepare_params(params)  # one-time prep, outside the hot path

    x, attn, energy = multi_head_attention(query, key_value, prepped, n_heads=n_heads)
    jax.block_until_ready((x, attn, energy))

    x_ref, attn_ref, energy_ref = reference(query, key_value, params, n_heads=n_heads)
    # bf16 MXU operands (f32 accumulation) -> slightly loosened tolerances.
    assert jnp.allclose(x, x_ref, atol=2e-2, rtol=2e-2)
    assert jnp.allclose(attn, attn_ref, atol=2e-2, rtol=2e-2)
    assert jnp.allclose(energy, energy_ref, atol=2e-2, rtol=2e-2)

    print("KERNEL_OK")
</pallas_src>

<mosaic_0001>
module attributes {stable_mosaic.version = 11 : i64} {
  func.func @_mha_kernel(%arg0: i32, %arg1: memref<2x8x32xf32, #tpu.memory_space<vmem>>, %arg2: memref<2x16x16xf32, #tpu.memory_space<vmem>>, %arg3: memref<32x32xbf16, #tpu.memory_space<vmem>>, %arg4: memref<16x64xbf16, #tpu.memory_space<vmem>>, %arg5: memref<32x32xbf16, #tpu.memory_space<vmem>>, %arg6: memref<1x32xf32, #tpu.memory_space<vmem>>, %arg7: memref<2x8x32xf32, #tpu.memory_space<vmem>>, %arg8: memref<2x4x8x16xf32, #tpu.memory_space<vmem>>, %arg9: memref<2x4x8x16xf32, #tpu.memory_space<vmem>>) attributes {dimension_semantics = [#tpu.dimension_semantics<parallel>], iteration_bounds = array<i64: 1>, scalar_prefetch = 0 : i64, scratch_operands = 0 : i64, tpu.core_type = #tpu.core_type<tc>, window_params = [{transform_indices = @transform_0, window_bounds = array<i64: 2, 8, 32>}, {transform_indices = @transform_1, window_bounds = array<i64: 2, 16, 16>}, {pipeline_mode = #tpu.pipeline_mode<synchronous>, transform_indices = @transform_2, window_bounds = array<i64: 32, 32>}, {pipeline_mode = #tpu.pipeline_mode<synchronous>, transform_indices = @transform_3, window_bounds = array<i64: 16, 64>}, {pipeline_mode = #tpu.pipeline_mode<synchronous>, transform_indices = @transform_4, window_bounds = array<i64: 32, 32>}, {pipeline_mode = #tpu.pipeline_mode<synchronous>, transform_indices = @transform_5, window_bounds = array<i64: 1, 32>}, {transform_indices = @transform_6, window_bounds = array<i64: 2, 8, 32>}, {transform_indices = @transform_7, window_bounds = array<i64: 2, 4, 8, 16>}, {transform_indices = @transform_8, window_bounds = array<i64: 2, 4, 8, 16>}]} {
    %c0 = arith.constant 0 : index
    %c0_0 = arith.constant 0 : index
    %c0_1 = arith.constant 0 : index
    %0 = vector.load %arg1[%c0, %c0_0, %c0_1] : memref<2x8x32xf32, #tpu.memory_space<vmem>>, vector<2x8x32xf32>
    %1 = vector.shape_cast %0 : vector<2x8x32xf32> to vector<16x32xf32>
    %2 = arith.truncf %1 : vector<16x32xf32> to vector<16x32xbf16>
    %c0_2 = arith.constant 0 : index
    %c0_3 = arith.constant 0 : index
    %c0_4 = arith.constant 0 : index
    %3 = vector.load %arg2[%c0_2, %c0_3, %c0_4] : memref<2x16x16xf32, #tpu.memory_space<vmem>>, vector<2x16x16xf32>
    %4 = vector.shape_cast %3 : vector<2x16x16xf32> to vector<32x16xf32>
    %5 = arith.truncf %4 : vector<32x16xf32> to vector<32x16xbf16>
    %c0_5 = arith.constant 0 : index
    %c0_6 = arith.constant 0 : index
    %6 = vector.load %arg3[%c0_5, %c0_6] : memref<32x32xbf16, #tpu.memory_space<vmem>>, vector<32x32xbf16>
    %cst = arith.constant dense<0.000000e+00> : vector<16x32xf32>
    %7 = tpu.matmul %2, %6, %cst {dimension_numbers = #tpu.dot_dimension_numbers<[1], [0], [0], [1], [0, 0, 1, 1], [], []>} : vector<16x32xbf16>, vector<32x32xbf16>, vector<16x32xf32> -> vector<16x32xf32>
    %c0_7 = arith.constant 0 : index
    %c0_8 = arith.constant 0 : index
    %8 = vector.load %arg4[%c0_7, %c0_8] : memref<16x64xbf16, #tpu.memory_space<vmem>>, vector<16x64xbf16>
    %cst_9 = arith.constant dense<0.000000e+00> : vector<32x64xf32>
    %9 = tpu.matmul %5, %8, %cst_9 {dimension_numbers = #tpu.dot_dimension_numbers<[1], [0], [0], [1], [0, 0, 1, 1], [], []>} : vector<32x16xbf16>, vector<16x64xbf16>, vector<32x64xf32> -> vector<32x64xf32>
    %10 = vector.extract_strided_slice %9 {offsets = [0, 0], sizes = [32, 32], strides = [1, 1]} : vector<32x64xf32> to vector<32x32xf32>
    %11 = vector.extract_strided_slice %9 {offsets = [0, 32], sizes = [32, 32], strides = [1, 1]} : vector<32x64xf32> to vector<32x32xf32>
    %12 = vector.shape_cast %7 : vector<16x32xf32> to vector<2x8x32xf32>
    %13 = arith.truncf %12 : vector<2x8x32xf32> to vector<2x8x32xbf16>
    %14 = vector.shape_cast %10 : vector<32x32xf32> to vector<2x16x32xf32>
    %15 = arith.truncf %14 : vector<2x16x32xf32> to vector<2x16x32xbf16>
    %16 = vector.shape_cast %11 : vector<32x32xf32> to vector<2x16x32xf32>
    %17 = arith.truncf %16 : vector<2x16x32xf32> to vector<2x16x32xbf16>
    %18 = vector.extract_strided_slice %13 {offsets = [0, 0, 0], sizes = [2, 8, 8], strides = [1, 1, 1]} : vector<2x8x32xbf16> to vector<2x8x8xbf16>
    %19 = vector.extract_strided_slice %15 {offsets = [0, 0, 0], sizes = [2, 16, 8], strides = [1, 1, 1]} : vector<2x16x32xbf16> to vector<2x16x8xbf16>
    "tpu.trace_start"() <{level = 10 : i32, message = "bqd,bkd->bqk"}> : () -> ()
    %cst_10 = arith.constant dense<0.000000e+00> : vector<2x8x16xf32>
    %20 = tpu.matmul %18, %19, %cst_10 {dimension_numbers = #tpu.dot_dimension_numbers<[2], [2], [1], [1], [0, 0, 0, 1, 1, 1], [0], [0]>} : vector<2x8x8xbf16>, vector<2x16x8xbf16>, vector<2x8x16xf32> -> vector<2x8x16xf32>
    "tpu.trace_stop"() : () -> ()
    %cst_11 = arith.constant 0.353553385 : f32
    %21 = vector.broadcast %cst_11 : f32 to vector<2x8x16xf32>
    %22 = arith.mulf %20, %21 : vector<2x8x16xf32>
    %cst_12 = arith.constant dense<0xFF800000> : vector<2x8xf32>
    %23 = vector.multi_reduction <maximumf>, %22, %cst_12 [2] : vector<2x8x16xf32> to vector<2x8xf32>
    %24 = vector.shape_cast %23 : vector<2x8xf32> to vector<2x8x1xf32>
    %25 = vector.broadcast %24 : vector<2x8x1xf32> to vector<2x8x16xf32>
    %26 = arith.subf %22, %25 : vector<2x8x16xf32>
    %27 = math.exp %26 : vector<2x8x16xf32>
    %cst_13 = arith.constant dense<0.000000e+00> : vector<2x8xf32>
    %28 = vector.multi_reduction <add>, %27, %cst_13 [2] : vector<2x8x16xf32> to vector<2x8xf32>
    %29 = vector.shape_cast %28 : vector<2x8xf32> to vector<2x8x1xf32>
    %30 = vector.broadcast %29 : vector<2x8x1xf32> to vector<2x8x16xf32>
    %31 = arith.divf %27, %30 : vector<2x8x16xf32>
    %c0_14 = arith.constant 0 : index
    %c0_15 = arith.constant 0 : index
    %c0_16 = arith.constant 0 : index
    %c0_17 = arith.constant 0 : index
    %32 = vector.load %arg9[%c0_14, %c0_15, %c0_16, %c0_17] : memref<2x4x8x16xf32, #tpu.memory_space<vmem>>, vector<2x1x8x16xf32>
    %33 = vector.shape_cast %32 : vector<2x1x8x16xf32> to vector<2x8x16xf32>
    %34 = vector.shape_cast %22 : vector<2x8x16xf32> to vector<2x1x8x16xf32>
    tpu.vector_store %arg9[%c0_14, %c0_15, %c0_16, %c0_17], %34 {strides = array<i32>} : memref<2x4x8x16xf32, #tpu.memory_space<vmem>>, vector<2x1x8x16xf32>,
    %c0_18 = arith.constant 0 : index
    %c0_19 = arith.constant 0 : index
    %c0_20 = arith.constant 0 : index
    %c0_21 = arith.constant 0 : index
    %35 = vector.load %arg8[%c0_18, %c0_19, %c0_20, %c0_21] : memref<2x4x8x16xf32, #tpu.memory_space<vmem>>, vector<2x1x8x16xf32>
    %36 = vector.shape_cast %35 : vector<2x1x8x16xf32> to vector<2x8x16xf32>
    %37 = vector.shape_cast %31 : vector<2x8x16xf32> to vector<2x1x8x16xf32>
    tpu.vector_store %arg8[%c0_18, %c0_19, %c0_20, %c0_21], %37 {strides = array<i32>} : memref<2x4x8x16xf32, #tpu.memory_space<vmem>>, vector<2x1x8x16xf32>,
    %38 = arith.truncf %31 : vector<2x8x16xf32> to vector<2x8x16xbf16>
    %39 = vector.extract_strided_slice %17 {offsets = [0, 0, 0], sizes = [2, 16, 8], strides = [1, 1, 1]} : vector<2x16x32xbf16> to vector<2x16x8xbf16>
    "tpu.trace_start"() <{level = 10 : i32, message = "bqk,bkd->bqd"}> : () -> ()
    %cst_22 = arith.constant dense<0.000000e+00> : vector<2x8x8xf32>
    %40 = tpu.matmul %38, %39, %cst_22 {dimension_numbers = #tpu.dot_dimension_numbers<[2], [1], [1], [2], [0, 0, 0, 1, 1, 2], [0], [0]>} : vector<2x8x16xbf16>, vector<2x16x8xbf16>, vector<2x8x8xf32> -> vector<2x8x8xf32>
    "tpu.trace_stop"() : () -> ()
    %41 = vector.extract_strided_slice %13 {offsets = [0, 0, 8], sizes = [2, 8, 8], strides = [1, 1, 1]} : vector<2x8x32xbf16> to vector<2x8x8xbf16>
    %42 = vector.extract_strided_slice %15 {offsets = [0, 0, 8], sizes = [2, 16, 8], strides = [1, 1, 1]} : vector<2x16x32xbf16> to vector<2x16x8xbf16>
    "tpu.trace_start"() <{level = 10 : i32, message = "bqd,bkd->bqk"}> : () -> ()
    %cst_23 = arith.constant dense<0.000000e+00> : vector<2x8x16xf32>
    %43 = tpu.matmul %41, %42, %cst_23 {dimension_numbers = #tpu.dot_dimension_numbers<[2], [2], [1], [1], [0, 0, 0, 1, 1, 1], [0], [0]>} : vector<2x8x8xbf16>, vector<2x16x8xbf16>, vector<2x8x16xf32> -> vector<2x8x16xf32>
    "tpu.trace_stop"() : () -> ()
    %cst_24 = arith.constant 0.353553385 : f32
    %44 = vector.broadcast %cst_24 : f32 to vector<2x8x16xf32>
    %45 = arith.mulf %43, %44 : vector<2x8x16xf32>
    %cst_25 = arith.constant dense<0xFF800000> : vector<2x8xf32>
    %46 = vector.multi_reduction <maximumf>, %45, %cst_25 [2] : vector<2x8x16xf32> to vector<2x8xf32>
    %47 = vector.shape_cast %46 : vector<2x8xf32> to vector<2x8x1xf32>
    %48 = vector.broadcast %47 : vector<2x8x1xf32> to vector<2x8x16xf32>
    %49 = arith.subf %45, %48 : vector<2x8x16xf32>
    %50 = math.exp %49 : vector<2x8x16xf32>
    %cst_26 = arith.constant dense<0.000000e+00> : vector<2x8xf32>
    %51 = vector.multi_reduction <add>, %50, %cst_26 [2] : vector<2x8x16xf32> to vector<2x8xf32>
    %52 = vector.shape_cast %51 : vector<2x8xf32> to vector<2x8x1xf32>
    %53 = vector.broadcast %52 : vector<2x8x1xf32> to vector<2x8x16xf32>
    %54 = arith.divf %50, %53 : vector<2x8x16xf32>
    %c0_27 = arith.constant 0 : index
    %c1 = arith.constant 1 : index
    %c0_28 = arith.constant 0 : index
    %c0_29 = arith.constant 0 : index
    %55 = vector.load %arg9[%c0_27, %c1, %c0_28, %c0_29] : memref<2x4x8x16xf32, #tpu.memory_space<vmem>>, vector<2x1x8x16xf32>
    %56 = vector.shape_cast %55 : vector<2x1x8x16xf32> to vector<2x8x16xf32>
    %57 = vector.shape_cast %45 : vector<2x8x16xf32> to vector<2x1x8x16xf32>
    tpu.vector_store %arg9[%c0_27, %c1, %c0_28, %c0_29], %57 {strides = array<i32>} : memref<2x4x8x16xf32, #tpu.memory_space<vmem>>, vector<2x1x8x16xf32>,
    %c0_30 = arith.constant 0 : index
    %c1_31 = arith.constant 1 : index
    %c0_32 = arith.constant 0 : index
    %c0_33 = arith.constant 0 : index
    %58 = vector.load %arg8[%c0_30, %c1_31, %c0_32, %c0_33] : memref<2x4x8x16xf32, #tpu.memory_space<vmem>>, vector<2x1x8x16xf32>
    %59 = vector.shape_cast %58 : vector<2x1x8x16xf32> to vector<2x8x16xf32>
    %60 = vector.shape_cast %54 : vector<2x8x16xf32> to vector<2x1x8x16xf32>
    tpu.vector_store %arg8[%c0_30, %c1_31, %c0_32, %c0_33], %60 {strides = array<i32>} : memref<2x4x8x16xf32, #tpu.memory_space<vmem>>, vector<2x1x8x16xf32>,
    %61 = arith.truncf %54 : vector<2x8x16xf32> to vector<2x8x16xbf16>
    %62 = vector.extract_strided_slice %17 {offsets = [0, 0, 8], sizes = [2, 16, 8], strides = [1, 1, 1]} : vector<2x16x32xbf16> to vector<2x16x8xbf16>
    "tpu.trace_start"() <{level = 10 : i32, message = "bqk,bkd->bqd"}> : () -> ()
    %cst_34 = arith.constant dense<0.000000e+00> : vector<2x8x8xf32>
    %63 = tpu.matmul %61, %62, %cst_34 {dimension_numbers = #tpu.dot_dimension_numbers<[2], [1], [1], [2], [0, 0, 0, 1, 1, 2], [0], [0]>} : vector<2x8x16xbf16>, vector<2x16x8xbf16>, vector<2x8x8xf32> -> vector<2x8x8xf32>
    "tpu.trace_stop"() : () -> ()
    %64 = vector.extract_strided_slice %13 {offsets = [0, 0, 16], sizes = [2, 8, 8], strides = [1, 1, 1]} : vector<2x8x32xbf16> to vector<2x8x8xbf16>
    %65 = vector.extract_strided_slice %15 {offsets = [0, 0, 16], sizes = [2, 16, 8], strides = [1, 1, 1]} : vector<2x16x32xbf16> to vector<2x16x8xbf16>
    "tpu.trace_start"() <{level = 10 : i32, message = "bqd,bkd->bqk"}> : () -> ()
    %cst_35 = arith.constant dense<0.000000e+00> : vector<2x8x16xf32>
    %66 = tpu.matmul %64, %65, %cst_35 {dimension_numbers = #tpu.dot_dimension_numbers<[2], [2], [1], [1], [0, 0, 0, 1, 1, 1], [0], [0]>} : vector<2x8x8xbf16>, vector<2x16x8xbf16>, vector<2x8x16xf32> -> vector<2x8x16xf32>
    "tpu.trace_stop"() : () -> ()
    %cst_36 = arith.constant 0.353553385 : f32
    %67 = vector.broadcast %cst_36 : f32 to vector<2x8x16xf32>
    %68 = arith.mulf %66, %67 : vector<2x8x16xf32>
    %cst_37 = arith.constant dense<0xFF800000> : vector<2x8xf32>
    %69 = vector.multi_reduction <maximumf>, %68, %cst_37 [2] : vector<2x8x16xf32> to vector<2x8xf32>
    %70 = vector.shape_cast %69 : vector<2x8xf32> to vector<2x8x1xf32>
    %71 = vector.broadcast %70 : vector<2x8x1xf32> to vector<2x8x16xf32>
    %72 = arith.subf %68, %71 : vector<2x8x16xf32>
    %73 = math.exp %72 : vector<2x8x16xf32>
    %cst_38 = arith.constant dense<0.000000e+00> : vector<2x8xf32>
    %74 = vector.multi_reduction <add>, %73, %cst_38 [2] : vector<2x8x16xf32> to vector<2x8xf32>
    %75 = vector.shape_cast %74 : vector<2x8xf32> to vector<2x8x1xf32>
    %76 = vector.broadcast %75 : vector<2x8x1xf32> to vector<2x8x16xf32>
    %77 = arith.divf %73, %76 : vector<2x8x16xf32>
    %c0_39 = arith.constant 0 : index
    %c2 = arith.constant 2 : index
    %c0_40 = arith.constant 0 : index
    %c0_41 = arith.constant 0 : index
    %78 = vector.load %arg9[%c0_39, %c2, %c0_40, %c0_41] : memref<2x4x8x16xf32, #tpu.memory_space<vmem>>, vector<2x1x8x16xf32>
    %79 = vector.shape_cast %78 : vector<2x1x8x16xf32> to vector<2x8x16xf32>
    %80 = vector.shape_cast %68 : vector<2x8x16xf32> to vector<2x1x8x16xf32>
    tpu.vector_store %arg9[%c0_39, %c2, %c0_40, %c0_41], %80 {strides = array<i32>} : memref<2x4x8x16xf32, #tpu.memory_space<vmem>>, vector<2x1x8x16xf32>,
    %c0_42 = arith.constant 0 : index
    %c2_43 = arith.constant 2 : index
    %c0_44 = arith.constant 0 : index
    %c0_45 = arith.constant 0 : index
    %81 = vector.load %arg8[%c0_42, %c2_43, %c0_44, %c0_45] : memref<2x4x8x16xf32, #tpu.memory_space<vmem>>, vector<2x1x8x16xf32>
    %82 = vector.shape_cast %81 : vector<2x1x8x16xf32> to vector<2x8x16xf32>
    %83 = vector.shape_cast %77 : vector<2x8x16xf32> to vector<2x1x8x16xf32>
    tpu.vector_store %arg8[%c0_42, %c2_43, %c0_44, %c0_45], %83 {strides = array<i32>} : memref<2x4x8x16xf32, #tpu.memory_space<vmem>>, vector<2x1x8x16xf32>,
    %84 = arith.truncf %77 : vector<2x8x16xf32> to vector<2x8x16xbf16>
    %85 = vector.extract_strided_slice %17 {offsets = [0, 0, 16], sizes = [2, 16, 8], strides = [1, 1, 1]} : vector<2x16x32xbf16> to vector<2x16x8xbf16>
    "tpu.trace_start"() <{level = 10 : i32, message = "bqk,bkd->bqd"}> : () -> ()
    %cst_46 = arith.constant dense<0.000000e+00> : vector<2x8x8xf32>
    %86 = tpu.matmul %84, %85, %cst_46 {dimension_numbers = #tpu.dot_dimension_numbers<[2], [1], [1], [2], [0, 0, 0, 1, 1, 2], [0], [0]>} : vector<2x8x16xbf16>, vector<2x16x8xbf16>, vector<2x8x8xf32> -> vector<2x8x8xf32>
    "tpu.trace_stop"() : () -> ()
    %87 = vector.extract_strided_slice %13 {offsets = [0, 0, 24], sizes = [2, 8, 8], strides = [1, 1, 1]} : vector<2x8x32xbf16> to vector<2x8x8xbf16>
    %88 = vector.extract_strided_slice %15 {offsets = [0, 0, 24], sizes = [2, 16, 8], strides = [1, 1, 1]} : vector<2x16x32xbf16> to vector<2x16x8xbf16>
    "tpu.trace_start"() <{level = 10 : i32, message = "bqd,bkd->bqk"}> : () -> ()
    %cst_47 = arith.constant dense<0.000000e+00> : vector<2x8x16xf32>
    %89 = tpu.matmul %87, %88, %cst_47 {dimension_numbers = #tpu.dot_dimension_numbers<[2], [2], [1], [1], [0, 0, 0, 1, 1, 1], [0], [0]>} : vector<2x8x8xbf16>, vector<2x16x8xbf16>, vector<2x8x16xf32> -> vector<2x8x16xf32>
    "tpu.trace_stop"() : () -> ()
    %cst_48 = arith.constant 0.353553385 : f32
    %90 = vector.broadcast %cst_48 : f32 to vector<2x8x16xf32>
    %91 = arith.mulf %89, %90 : vector<2x8x16xf32>
    %cst_49 = arith.constant dense<0xFF800000> : vector<2x8xf32>
    %92 = vector.multi_reduction <maximumf>, %91, %cst_49 [2] : vector<2x8x16xf32> to vector<2x8xf32>
    %93 = vector.shape_cast %92 : vector<2x8xf32> to vector<2x8x1xf32>
    %94 = vector.broadcast %93 : vector<2x8x1xf32> to vector<2x8x16xf32>
    %95 = arith.subf %91, %94 : vector<2x8x16xf32>
    %96 = math.exp %95 : vector<2x8x16xf32>
    %cst_50 = arith.constant dense<0.000000e+00> : vector<2x8xf32>
    %97 = vector.multi_reduction <add>, %96, %cst_50 [2] : vector<2x8x16xf32> to vector<2x8xf32>
    %98 = vector.shape_cast %97 : vector<2x8xf32> to vector<2x8x1xf32>
    %99 = vector.broadcast %98 : vector<2x8x1xf32> to vector<2x8x16xf32>
    %100 = arith.divf %96, %99 : vector<2x8x16xf32>
    %c0_51 = arith.constant 0 : index
    %c3 = arith.constant 3 : index
    %c0_52 = arith.constant 0 : index
    %c0_53 = arith.constant 0 : index
    %101 = vector.load %arg9[%c0_51, %c3, %c0_52, %c0_53] : memref<2x4x8x16xf32, #tpu.memory_space<vmem>>, vector<2x1x8x16xf32>
    %102 = vector.shape_cast %101 : vector<2x1x8x16xf32> to vector<2x8x16xf32>
    %103 = vector.shape_cast %91 : vector<2x8x16xf32> to vector<2x1x8x16xf32>
    tpu.vector_store %arg9[%c0_51, %c3, %c0_52, %c0_53], %103 {strides = array<i32>} : memref<2x4x8x16xf32, #tpu.memory_space<vmem>>, vector<2x1x8x16xf32>,
    %c0_54 = arith.constant 0 : index
    %c3_55 = arith.constant 3 : index
    %c0_56 = arith.constant 0 : index
    %c0_57 = arith.constant 0 : index
    %104 = vector.load %arg8[%c0_54, %c3_55, %c0_56, %c0_57] : memref<2x4x8x16xf32, #tpu.memory_space<vmem>>, vector<2x1x8x16xf32>
    %105 = vector.shape_cast %104 : vector<2x1x8x16xf32> to vector<2x8x16xf32>
    %106 = vector.shape_cast %100 : vector<2x8x16xf32> to vector<2x1x8x16xf32>
    tpu.vector_store %arg8[%c0_54, %c3_55, %c0_56, %c0_57], %106 {strides = array<i32>} : memref<2x4x8x16xf32, #tpu.memory_space<vmem>>, vector<2x1x8x16xf32>,
    %107 = arith.truncf %100 : vector<2x8x16xf32> to vector<2x8x16xbf16>
    %108 = vector.extract_strided_slice %17 {offsets = [0, 0, 24], sizes = [2, 16, 8], strides = [1, 1, 1]} : vector<2x16x32xbf16> to vector<2x16x8xbf16>
    "tpu.trace_start"() <{level = 10 : i32, message = "bqk,bkd->bqd"}> : () -> ()
    %cst_58 = arith.constant dense<0.000000e+00> : vector<2x8x8xf32>
    %109 = tpu.matmul %107, %108, %cst_58 {dimension_numbers = #tpu.dot_dimension_numbers<[2], [1], [1], [2], [0, 0, 0, 1, 1, 2], [0], [0]>} : vector<2x8x16xbf16>, vector<2x16x8xbf16>, vector<2x8x8xf32> -> vector<2x8x8xf32>
    "tpu.trace_stop"() : () -> ()
    %110 = tpu.concatenate %40, %63, %86, %109 in 2 : vector<2x8x8xf32>, vector<2x8x8xf32>, vector<2x8x8xf32>, vector<2x8x8xf32> -> vector<2x8x32xf32>
    %111 = vector.shape_cast %110 : vector<2x8x32xf32> to vector<16x32xf32>
    %112 = arith.truncf %111 : vector<16x32xf32> to vector<16x32xbf16>
    %c0_59 = arith.constant 0 : index
    %c0_60 = arith.constant 0 : index
    %113 = vector.load %arg5[%c0_59, %c0_60] : memref<32x32xbf16, #tpu.memory_space<vmem>>, vector<32x32xbf16>
    %cst_61 = arith.constant dense<0.000000e+00> : vector<16x32xf32>
    %114 = tpu.matmul %112, %113, %cst_61 {dimension_numbers = #tpu.dot_dimension_numbers<[1], [0], [0], [1], [0, 0, 1, 1], [], []>} : vector<16x32xbf16>, vector<32x32xbf16>, vector<16x32xf32> -> vector<16x32xf32>
    %c0_62 = arith.constant 0 : index
    %c0_63 = arith.constant 0 : index
    %115 = vector.load %arg6[%c0_62, %c0_63] : memref<1x32xf32, #tpu.memory_space<vmem>>, vector<1x32xf32>
    %116 = vector.broadcast %115 : vector<1x32xf32> to vector<16x32xf32>
    %117 = arith.addf %114, %116 : vector<16x32xf32>
    %118 = vector.shape_cast %117 : vector<16x32xf32> to vector<2x8x32xf32>
    %c0_64 = arith.constant 0 : index
    %c0_65 = arith.constant 0 : index
    %c0_66 = arith.constant 0 : index
    %119 = vector.load %arg7[%c0_64, %c0_65, %c0_66] : memref<2x8x32xf32, #tpu.memory_space<vmem>>, vector<2x8x32xf32>
    tpu.vector_store %arg7[%c0_64, %c0_65, %c0_66], %118 {strides = array<i32>} : memref<2x8x32xf32, #tpu.memory_space<vmem>>, vector<2x8x32xf32>,
    return
  }
  func.func @transform_0(%arg0: i32) -> (i32, i32, i32) {
    %c0_i32 = arith.constant 0 : i32
    %c0_i32_0 = arith.constant 0 : i32
    %c0_i32_1 = arith.constant 0 : i32
    return %arg0, %c0_i32, %c0_i32_0 : i32, i32, i32
  }
  func.func @transform_1(%arg0: i32) -> (i32, i32, i32) {
    %c0_i32 = arith.constant 0 : i32
    %c0_i32_0 = arith.constant 0 : i32
    %c0_i32_1 = arith.constant 0 : i32
    return %arg0, %c0_i32, %c0_i32_0 : i32, i32, i32
  }
  func.func @transform_2(%arg0: i32) -> (i32, i32) {
    %c0_i32 = arith.constant 0 : i32
    %c0_i32_0 = arith.constant 0 : i32
    %c0_i32_1 = arith.constant 0 : i32
    return %c0_i32, %c0_i32_0 : i32, i32
  }
  func.func @transform_3(%arg0: i32) -> (i32, i32) {
    %c0_i32 = arith.constant 0 : i32
    %c0_i32_0 = arith.constant 0 : i32
    %c0_i32_1 = arith.constant 0 : i32
    return %c0_i32, %c0_i32_0 : i32, i32
  }
  func.func @transform_4(%arg0: i32) -> (i32, i32) {
    %c0_i32 = arith.constant 0 : i32
    %c0_i32_0 = arith.constant 0 : i32
    %c0_i32_1 = arith.constant 0 : i32
    return %c0_i32, %c0_i32_0 : i32, i32
  }
  func.func @transform_5(%arg0: i32) -> (i32, i32) {
    %c0_i32 = arith.constant 0 : i32
    %c0_i32_0 = arith.constant 0 : i32
    %c0_i32_1 = arith.constant 0 : i32
    return %c0_i32, %c0_i32_0 : i32, i32
  }
  func.func @transform_6(%arg0: i32) -> (i32, i32, i32) {
    %c0_i32 = arith.constant 0 : i32
    %c0_i32_0 = arith.constant 0 : i32
    %c0_i32_1 = arith.constant 0 : i32
    return %arg0, %c0_i32, %c0_i32_0 : i32, i32, i32
  }
  func.func @transform_7(%arg0: i32) -> (i32, i32, i32, i32) {
    %c0_i32 = arith.constant 0 : i32
    %c0_i32_0 = arith.constant 0 : i32
    %c0_i32_1 = arith.constant 0 : i32
    %c0_i32_2 = arith.constant 0 : i32
    return %arg0, %c0_i32, %c0_i32_0, %c0_i32_1 : i32, i32, i32, i32
  }
  func.func @transform_8(%arg0: i32) -> (i32, i32, i32, i32) {
    %c0_i32 = arith.constant 0 : i32
    %c0_i32_0 = arith.constant 0 : i32
    %c0_i32_1 = arith.constant 0 : i32
    %c0_i32_2 = arith.constant 0 : i32
    return %arg0, %c0_i32, %c0_i32_0, %c0_i32_1 : i32, i32, i32, i32
  }
}

</mosaic_0001>

<bundles_post_ra>
// kernel: multi_head_attention.1
= control target key start
LH: loop header
LB: loop body
LE: loop exit
PB: predicated region body
PF: predicated region fallthrough
CT: control target
= control target key end

     0   :  { %14 = vsyncpa [#allocation3], 0  ;;  %s2045_s0 = inlined_call_operand.hbm [shape: f32[2,8,32], index: 0, kind: input, shape index: {}]   ;;  %s2046_s1 = inlined_call_operand.hbm [shape: f32[2,16,16], index: 1, kind: input, shape index: {}]   ;;  %s2047_s2 = inlined_call_operand.vmem [shape: bf16[32,32], index: 2, kind: input, shape index: {}]   ;;  %s2048_s3 = inlined_call_operand.hbm [shape: bf16[16,64], index: 3, kind: input, shape index: {}]   ;;  %s2049_s4 = inlined_call_operand.hbm [shape: bf16[32,32], index: 4, kind: input, shape index: {}]   ;;  %s2050_s5 = inlined_call_operand.vmem [shape: f32[1,32], index: 5, kind: input, shape index: {}]   ;;  %s2051_s6 = inlined_call_operand.hbm [shape: f32[2,8,32], index: 6, kind: output, shape index: {0}]   ;;  %s2052_s7 = inlined_call_operand.hbm [shape: f32[2,4,8,16], index: 7, kind: output, shape index: {1}]   ;;  %s2053_s8 = inlined_call_operand.hbm [shape: f32[2,4,8,16], index: 8, kind: output, shape index: {2}]  }
   0x1   :  { %15 = vsyncpa [#allocation6], 0 }
   0x2   :  { %16 = vsyncpa [#allocation9], 0 }
   0x3   :  { %17 = vsyncpa [#allocation4], 0 }
   0x4   :  { %18 = vsyncpa [#allocation12], 0  ;;  %s1687_s27 = smov [#allocation5]   ;;  %s1688_s29 = smov [#allocation2]  }
   0x5   :  { %s36_s28 = sshll.u32 %s1687_s27, 4  ;;  %s24_s30 = sshll.u32 %s1688_s29, 4  ;;  %s37_s28 = int_to_ptr.vmem [resolvable:$true] %s36_s28  ;;  %s1754_s30 = int_to_ptr.vmem [resolvable:$true] %s24_s30 }
   0x6   :  { %s1523_s11 = scalar_lea.hbm %s2046_s1, 512 }
   0x7   :  { %p1524_p0 = scmp.ne.s32.totalorder %s2046_s1, %s1523_s11  ;;  %p1527_p1 = scmp.lt.u32.totalorder %s1523_s11, %s2046_s1 }
   0x9   :  { %p1529_p2 = pnand %p1527_p1, %p1524_p0 }
   0xb   :  { %1532 = shalt.err (!%p1529_p2)
}
   0xc   :  { %s1533_s16 = scalar_lea.vmem %s37_s28, 512  ;;  %p1538_p4 = scmp.lt.s32.totalorder %s37_s28, %s37_s28 }
   0xd   :  { %p1534_p3 = scmp.ne.s32.totalorder %s37_s28, %s1533_s16  ;;  %p1539_p5 = scmp.lt.s32.totalorder %s1533_s16, %s1533_s16 }
   0xf   :  { %p1540_p6 = por %p1539_p5, %p1538_p4 }
  0x11   :  { %p1541_p7 = pnand %p1540_p6, %p1534_p3 }
  0x13   :  { %1544 = shalt.err (!%p1541_p7)
}
  0x14   :  { %s1689_s17 = smov 128   ;;  %s1690_s18 = smov 8  }
  0x15   :  { %42 = dma.hbm_to_vmem [thread:$0]  %s2046_s1, 512, %s37_s28, [#allocation6], %s1689_s17, %s1689_s17, %s1690_s18  }
  0x16   :  { %s1545_s23 = scalar_lea.hbm %s2045_s0, 256 }
  0x17   :  { %p1546_p8 = scmp.ne.s32.totalorder %s2045_s0, %s1545_s23  ;;  %p1549_p9 = scmp.lt.u32.totalorder %s1545_s23, %s2045_s0 }
  0x19   :  { %p1551_p10 = pnand %p1549_p9, %p1546_p8 }
  0x1b   :  { %1554 = shalt.err (!%p1551_p10)
}
  0x1c   :  { %s1555_s29 = scalar_lea.vmem %s1754_s30, 256  ;;  %p1560_p12 = scmp.lt.s32.totalorder %s1754_s30, %s1754_s30 }
  0x1d   :  { %p1556_p11 = scmp.ne.s32.totalorder %s1754_s30, %s1555_s29  ;;  %p1561_p13 = scmp.lt.s32.totalorder %s1555_s29, %s1555_s29 }
  0x1f   :  { %p1562_p0 = por %p1561_p13, %p1560_p12 }
  0x21   :  { %p1563_p1 = pnand %p1562_p0, %p1556_p11 }
  0x23   :  { %1566 = shalt.err (!%p1563_p1)
}
  0x24   :  { %30 = dma.hbm_to_vmem [thread:$0]  %s2045_s0, 256, %s1754_s30, [#allocation3], %s1689_s17, %s1689_s17, %s1690_s18  }
  0x25   :  { %s1691_s9 = smov [#allocation7]   ;;  %s1567_s13 = scalar_lea.hbm %s2048_s3, 128 }
  0x26   :  { %s50_s10 = sshll.u32 %s1691_s9, 4  ;;  %p1568_p2 = scmp.ne.s32.totalorder %s2048_s3, %s1567_s13  ;;  %s51_s10 = int_to_ptr.vmem [resolvable:$true] %s50_s10 }
  0x27   :  { %p1571_p3 = scmp.lt.u32.totalorder %s1567_s13, %s2048_s3 }
  0x29   :  { %p1573_p4 = pnand %p1571_p3, %p1568_p2 }
  0x2b   :  { %1576 = shalt.err (!%p1573_p4)
}
  0x2c   :  { %s1577_s20 = scalar_lea.vmem %s51_s10, 128  ;;  %p1582_p6 = scmp.lt.s32.totalorder %s51_s10, %s51_s10 }
  0x2d   :  { %p1578_p5 = scmp.ne.s32.totalorder %s51_s10, %s1577_s20  ;;  %p1583_p7 = scmp.lt.s32.totalorder %s1577_s20, %s1577_s20 }
  0x2f   :  { %p1584_p8 = por %p1583_p7, %p1582_p6 }
  0x31   :  { %p1585_p9 = pnand %p1584_p8, %p1578_p5 }
  0x33   :  { %1588 = shalt.err (!%p1585_p9)
}
  0x34   :  { %s1692_s0 = smov 64   ;;  %s1693_s30 = smov 4  }
  0x35   :  { %56 = dma.hbm_to_vmem [thread:$0]  %s2048_s3, 128, %s51_s10, [#allocation6], %s1692_s0, %s1692_s0, %s1693_s30  }
  0x36   :  { %s1694_s23 = smov [#allocation8]   ;;  %s1589_s27 = scalar_lea.hbm %s2049_s4, 256 }
  0x37   :  { %s62_s24 = sshll.u32 %s1694_s23, 4  ;;  %p1590_p10 = scmp.ne.s32.totalorder %s2049_s4, %s1589_s27  ;;  %s63_s24 = int_to_ptr.vmem [resolvable:$true] %s62_s24 }
  0x38   :  { %p1593_p11 = scmp.lt.u32.totalorder %s1589_s27, %s2049_s4 }
  0x3a   :  { %p1595_p12 = pnand %p1593_p11, %p1590_p10 }
  0x3c   :  { %1598 = shalt.err (!%p1595_p12)
}
  0x3d   :  { %s1599_s11 = scalar_lea.vmem %s63_s24, 256  ;;  %p1604_p0 = scmp.lt.s32.totalorder %s63_s24, %s63_s24 }
  0x3e   :  { %p1600_p13 = scmp.ne.s32.totalorder %s63_s24, %s1599_s11  ;;  %p1605_p1 = scmp.lt.s32.totalorder %s1599_s11, %s1599_s11 }
  0x40   :  { %p1606_p2 = por %p1605_p1, %p1604_p0 }
  0x42   :  { %p1607_p3 = pnand %p1606_p2, %p1600_p13 }
  0x44   :  { %1610 = shalt.err (!%p1607_p3)
}
  0x45   :  { %68 = dma.hbm_to_vmem [thread:$0]  %s2049_s4, 256, %s63_s24, [#allocation9], %s1692_s0, %s1692_s0, %s1693_s30  }
  0x46   :  { %1677 = dma.done.wait [#allocation3], 256  }
  0x47   :  { %1678 = vsyncadd [#allocation3], 4294967040 }
  0x48   :  { %1679 = dma.done.wait [#allocation6], 640  }
  0x49   :  { %1680 = vsyncadd [#allocation6], 4294966656 }
  0x4a   :  { %1681 = dma.done.wait [#allocation9], 256  }
  0x4b   :  { %1682 = vsyncadd [#allocation9], 4294967040  ;;  %v1695_v0 = vmov 0.0   ;;  %vm1696_vm0 = vmmov 0   ;;  %v1486_v1 = vld [vmem:[#allocation7] sm:$0xff]   ;;  %v88_v3 = vld [vmem:[#allocation5 + $0x8] sm:$0xff] }
  0x4c   :  { %1331 = vmatprep.subr.bf16.mxu0 %v1695_v0  ;;  %1335 = vmatprep.mubr.msk.bf16.mxu0 %vm1696_vm0, %v1695_v0  ;;  %v87_v2 = vld [vmem:[#allocation5] sm:$0xff]  ;;  %vm162_vm1 = vcmask 130048   ;;  %v89_v4 = vld [vmem:[#allocation5 + $0x10] sm:$0xff]  ;;  %v90_v6 = vld [vmem:[#allocation5 + $0x18] sm:$0xff]  ;;  %vm109_vm2 = vcmask 261120   ;;  %vm222_vm3 = vcmask 64512  }
  0x4d   :  { %1339 = vmatprep.subr.bf16.mxu1 %v1486_v1  ;;  %v91_v5 = vpack.c.bf16 %v88_v3, %v87_v2  ;;  %v92_v7 = vpack.c.bf16 %v90_v6, %v89_v4  ;;  %v1487_v8 = vld [vmem:[%s2047_s2] sm:$0xff]   ;;  %v1488_v9 = vld [vmem:[%s2047_s2 + $0x8] sm:$0xff]   ;;  %s1697_s2 = smov 96   ;;  %s1698_s15 = smov 120   ;;  %vm1141_vm4 = vcmask 195584  }
  0x4e   :  { %1340 = vmatpush3.bf16.msra.mxu1 %v1486_v1  ;;  %v84_v10 = vld [vmem:[#allocation2] sm:$0xff]  ;;  %v85_v11 = vld [vmem:[#allocation2 + $0x8] sm:$0xff]  ;;  %1332 = vmatpush3.bf16.msra.mxu0 %v1487_v8  ;;  %s1699_s16 = smov 88   ;;  %s1700_s19 = smov 112  }
  0x4f   :  { %1341 = vmatprep.mubr.msk.bf16.mxu1 %vm162_vm1, %v91_v5  ;;  %1345 = vmatprep.subr.bf16.mxu1 %v1695_v0  ;;  %v86_v12 = vpack.c.bf16 %v85_v11, %v84_v10  ;;  %s1701_s20 = smov 80   ;;  %s1702_s0 = smov 104  }
  0x50   :  { %1333 = vmatprep.subr.bf16.mxu0 %v1695_v0  ;;  %s1703_s30 = smov 72   ;;  %s1704_s21 = smov 16  }
  0x51   :  { %1342 = vmatmul.mubr.msk.bf16.vlgmr.msra.gmra.mrb[0].mxu1 %vm162_vm1, %v92_v7  ;;  %s1705_s22 = smov 24   ;;  %s1706_s23 = smov [#allocation11]  }
  0x52   :  { %1347 = vmatprep.mubr.msk.bf16.mxu1 %vm1696_vm0, %v1695_v0  ;;  %1334 = vmatpush3.bf16.msra.mxu0 %v1488_v9  ;;  %s1231_s24 = sshll.u32 %s1706_s23, 4  ;;  %s1232_s24 = int_to_ptr.vmem [resolvable:$true] %s1231_s24 }
  0x53   :  { %1351 = vmatprep.subr.bf16.mxu0 %v1695_v0  ;;  %s1611_s25 = scalar_lea.vmem %s1232_s24, 1024  ;;  %p1616_p5 = scmp.lt.s32.totalorder %s1232_s24, %s1232_s24 }
  0x54   :  { %p1612_p4 = scmp.ne.s32.totalorder %s1232_s24, %s1611_s25  ;;  %p1617_p6 = scmp.lt.s32.totalorder %s1611_s25, %s1611_s25 }
  0x55   :  { %1336 = vmatmul.mubr.msk.bf16.vlgmr.msra.gmra.mrb[0].mxu0 %vm109_vm2, %v86_v12 }
  0x56   :  { %1353 = vmatprep.mubr.msk.bf16.mxu0 %vm1696_vm0, %v1695_v0  ;;  %p1618_p7 = por %p1617_p6, %p1616_p5 }
  0x58   :  { %p1619_p8 = pnand %p1618_p7, %p1612_p4 }
 0x124   :  { %v1343_v13 = vpop.f32.mrb[0].mxu1 }
 0x125   :  { %v203_v14 = vpop.f32.mrb[1].mxu1 }
 0x126   :  { %v1344_v15 = vpop.f32.mrb[2].mxu1 }
 0x127   :  { %v1834_v16 = vpack.c.bf16 %v1344_v15, %v1343_v13  ;;  %v206_v17 = vpop.f32.mrb[3].mxu1 }
 0x128   :  { %v1836_v18 = vpack.c.bf16 %v206_v17, %v203_v14  ;;  %v147_v21 = vpop.f32.mrb[0].mxu0 }
 0x129   :  { %393 = vrot.lane.b32.xlu1 %v1834_v16, %s1697_s2  ;;  %v273_v19 = vsel %vm222_vm3, %v1834_v16, 0  ;;  %v1337_v22 = vpop.f32.mrb[1].mxu0  ;;  %v1850_v26 = vpack.c.bf16 %v147_v21, %v147_v21 }
 0x12a   :  { %1352 = vmatpush3.bf16.xpose.msra.mxu0 %v273_v19  ;;  %v227_v20 = vsel %vm222_vm3, %v1836_v18, 0  ;;  %v150_v23 = vpop.f32.mrb[2].mxu0 }
 0x12b   :  { %1346 = vmatpush3.bf16.xpose.msra.mxu1 %v227_v20  ;;  %1363 = vmatprep.subr.bf16.mxu0 %v1695_v0  ;;  %v1848_v24 = vpack.c.bf16 %v150_v23, %v150_v23  ;;  %v1338_v25 = vpop.f32.mrb[3].mxu0 }
 0x12c   :  { %1357 = vmatprep.subr.bf16.mxu1 %v1695_v0 }
 0x12d   :  { %442 = vrot.lane.b32.xlu1 %v1836_v18, %s1698_s15 }
 0x131   :  { %1354 = vmatmul.mubr.msk.bf16.vlgmr.msra.gmra.mrb[4].mxu0 %vm222_vm3, %v1848_v24 }
 0x132   :  { %1348 = vmatmul.mubr.msk.bf16.vlgmr.msra.gmra.mrb[4].mxu1 %vm222_vm3, %v1850_v26  ;;  %1365 = vmatprep.mubr.msk.bf16.mxu0 %vm1696_vm0, %v1695_v0 }
 0x133   :  { %1359 = vmatprep.mubr.msk.bf16.mxu1 %vm1696_vm0, %v1695_v0 }
 0x19b   :  { %v394_v27 = vpop.permute.xlu1 %393 }
 0x19c   :  { %1364 = vmatpush3.bf16.msra.mxu0 %v394_v27 }
 0x19d   :  { %1375 = vmatprep.subr.bf16.mxu0 %v1695_v0 }
 0x19f   :  { %v443_v51 = vpop.permute.xlu1 %442 }
 0x1a0   :  { %v448_v62 = vsel %vm222_vm3, %v443_v51, 0 }
 0x204   :  { %v309_v28 = vpop.f32.mrb[4].mxu0 }
 0x205   :  { %v316_v29 = vmul.f32 0.35355338, %v309_v28  ;;  %v263_v30 = vpop.f32.mrb[4].mxu1  ;;  %v1355_v31 = vpop.f32.mrb[5].mxu0 }
 0x206   :  { %v315_v32 = vmul.f32 0.35355338, %v263_v30  ;;  %v1349_v33 = vpop.f32.mrb[5].mxu1  ;;  %v312_v34 = vpop.f32.mrb[6].mxu0 }
 0x207   :  { %340 = vst.msk [vmem:[#allocation13 + $0x20] sm:$0xff] %vm162_vm1, %v316_v29  ;;  %v266_v35 = vpop.f32.mrb[6].mxu1  ;;  %v1356_v36 = vpop.f32.mrb[7].mxu0  ;;  %v320_v39 = vsel %vm162_vm1, %v316_v29, -inf }
 0x208   :  { %339 = vst.msk [vmem:[#allocation13] sm:$0xff] %vm162_vm1, %v315_v32  ;;  %v1350_v37 = vpop.f32.mrb[7].mxu1  ;;  %v317_v38 = vsel %vm162_vm1, %v315_v32, -inf }
 0x209   :  { %318 = vmax.xlane.f32.xlu0 %v317_v38 }
 0x20d   :  { %321 = vmax.xlane.f32.xlu0 %v320_v39 }
 0x223   :  { %346 = vrot.lane.b32.xlu0 %v1836_v18, %s1697_s2 }
 0x227   :  { %440 = vrot.lane.b32.xlu0 %v1850_v26, %s1698_s15 }
 0x296   :  { %v319_v40 = vpop.xlane.xlu0 %318 }
 0x297   :  { %v323_v41 = vsub.f32 %v315_v32, %v319_v40 }
 0x299   :  { %v325_v44 = vmul.f32 1.442695, %v323_v41 }
 0x29a   :  { %v322_v42 = vpop.xlane.xlu0 %321 }
 0x29b   :  { %v324_v43 = vsub.f32 %v316_v29, %v322_v42 }
 0x29d   :  { %v327_v45 = vmul.f32 1.442695, %v324_v43 }
 0x29e   :  { %v347_v46 = vpop.permute.xlu0 %346 }
 0x29f   :  { %1491 = vpow2.f32 %v327_v45  ;;  %1358 = vmatpush3.bf16.msra.mxu1 %v347_v46 }
 0x2a0   :  { %1369 = vmatprep.subr.bf16.mxu1 %v1695_v0  ;;  %1493 = vpow2.f32 %v325_v44 }
 0x2a2   :  { %v441_v1 = vpop.permute.xlu0 %440 }
 0x2a9   :  { %v1492_v47 = vpop.eup %1491 }
 0x2aa   :  { %v332_v48 = vsel %vm162_vm1, %v1492_v47, 0.0  ;;  %v1494_v49 = vpop.eup %1493 }
 0x2ab   :  { %333 = vadd.xlane.f32.xlu1 %v332_v48  ;;  %v329_v50 = vsel %vm162_vm1, %v1494_v49, 0.0 }
 0x2af   :  { %330 = vadd.xlane.f32.xlu1 %v329_v50 }
 0x2c0   :  { %493 = vrot.lane.b32.xlu1 %v1834_v16, %s1698_s15 }
 0x2c4   :  { %491 = vrot.lane.b32.xlu1 %v1848_v24, %s1698_s15 }
 0x338   :  { %v334_v52 = vpop.xlane.xlu1 %333 }
 0x339   :  { %1495 = vrcp.f32 %v334_v52 }
 0x33c   :  { %v331_v53 = vpop.xlane.xlu1 %330 }
 0x33d   :  { %1497 = vrcp.f32 %v331_v53 }
 0x340   :  { %v494_v56 = vpop.permute.xlu1 %493 }
 0x341   :  { %v499_v60 = vsel %vm222_vm3, %v494_v56, 0 }
 0x343   :  { %v1496_v54 = vpop.eup %1495 }
 0x344   :  { %v338_v55 = vmul.f32 %v1496_v54, %v1492_v47  ;;  %v492_v63 = vpop.permute.xlu1 %491 }
 0x346   :  { %342 = vst.msk [vmem:[#allocation11 + $0x20] sm:$0xff] %vm162_vm1, %v338_v55  ;;  %v344_v57 = vpack.c.bf16 %v338_v55, %v338_v55 }
 0x347   :  { %v1498_v58 = vpop.eup %1497 }
 0x348   :  { %v336_v59 = vmul.f32 %v1498_v58, %v1494_v49  ;;  %1366 = vmatmul.mubr.msk.bf16.vlgmr.msra.gmra.mrb[8].mxu0 %vm162_vm1, %v344_v57 }
 0x349   :  { %1376 = vmatpush3.bf16.xpose.msra.mxu0 %v499_v60  ;;  %1377 = vmatprep.mubr.msk.bf16.mxu0 %vm1696_vm0, %v1695_v0 }
 0x34a   :  { %341 = vst.msk [vmem:[#allocation11] sm:$0xff] %vm162_vm1, %v336_v59  ;;  %v343_v61 = vpack.c.bf16 %v336_v59, %v336_v59  ;;  %1387 = vmatprep.subr.bf16.mxu0 %v1695_v0 }
 0x34c   :  { %1360 = vmatmul.mubr.msk.bf16.vlgmr.msra.gmra.mrb[8].mxu1 %vm162_vm1, %v343_v61 }
 0x34d   :  { %1370 = vmatpush3.bf16.xpose.msra.mxu1 %v448_v62  ;;  %1371 = vmatprep.mubr.msk.bf16.mxu1 %vm1696_vm0, %v1695_v0 }
 0x34e   :  { %1381 = vmatprep.subr.bf16.mxu1 %v1695_v0 }
 0x350   :  { %1378 = vmatmul.mubr.msk.bf16.vlgmr.msra.gmra.mrb[12].mxu0 %vm222_vm3, %v492_v63 }
 0x351   :  { %1389 = vmatprep.mubr.msk.bf16.mxu0 %vm1696_vm0, %v1695_v0 }
 0x354   :  { %1372 = vmatmul.mubr.msk.bf16.vlgmr.msra.gmra.mrb[12].mxu1 %vm222_vm3, %v441_v1 }
 0x355   :  { %1383 = vmatprep.mubr.msk.bf16.mxu1 %vm1696_vm0, %v1695_v0 }
 0x41b   :  { %v1894_v2 = vpop.f32.mrb[8].mxu0 }
 0x41c   :  { %v1367_v3 = vpop.f32.mrb[9].mxu0 }
 0x41d   :  { %v436_v4 = vpop.f32.mrb[10].mxu0 }
 0x41e   :  { %v1368_v5 = vpop.f32.mrb[11].mxu0 }
 0x41f   :  { %v1896_v6 = vpop.f32.mrb[8].mxu1 }
 0x420   :  { %v1361_v7 = vpop.f32.mrb[9].mxu1 }
 0x421   :  { %v389_v8 = vpop.f32.mrb[10].mxu1 }
 0x422   :  { %v1362_v9 = vpop.f32.mrb[11].mxu1 }
 0x423   :  { %v535_v10 = vpop.f32.mrb[12].mxu0 }
 0x424   :  { %v542_v11 = vmul.f32 0.35355338, %v535_v10  ;;  %v1379_v12 = vpop.f32.mrb[13].mxu0 }
 0x425   :  { %v538_v13 = vpop.f32.mrb[14].mxu0 }
 0x426   :  { %567 = vst.msk [vmem:[#allocation13 + $0x28] sm:$0xff] %vm162_vm1, %v542_v11  ;;  %v1380_v14 = vpop.f32.mrb[15].mxu0  ;;  %v546_v15 = vsel %vm162_vm1, %v542_v11, -inf }
 0x427   :  { %v484_v17 = vpop.f32.mrb[12].mxu1  ;;  %547 = vmax.xlane.f32.xlu1 %v546_v15 }
 0x428   :  { %v541_v19 = vmul.f32 0.35355338, %v484_v17  ;;  %v1373_v20 = vpop.f32.mrb[13].mxu1 }
 0x429   :  { %v487_v21 = vpop.f32.mrb[14].mxu1 }
 0x42a   :  { %566 = vst.msk [vmem:[#allocation13 + $0x8] sm:$0xff] %vm162_vm1, %v541_v19  ;;  %v1374_v22 = vpop.f32.mrb[15].mxu1  ;;  %v543_v23 = vsel %vm162_vm1, %v541_v19, -inf }
 0x42b   :  { %544 = vmax.xlane.f32.xlu0 %v543_v23 }
 0x438   :  { %619 = vrot.lane.b32.xlu1 %v1834_v16, %s1699_s16 }
 0x43c   :  { %667 = vrot.lane.b32.xlu1 %v1836_v18, %s1700_s19 }
 0x440   :  { %717 = vrot.lane.b32.xlu1 %v1834_v16, %s1700_s19 }
 0x444   :  { %715 = vrot.lane.b32.xlu1 %v1848_v24, %s1700_s19 }
 0x4b4   :  { %v548_v25 = vpop.xlane.xlu1 %547 }
 0x4b5   :  { %v550_v27 = vsub.f32 %v542_v11, %v548_v25 }
 0x4b7   :  { %v553_v28 = vmul.f32 1.442695, %v550_v27 }
 0x4b8   :  { %v545_v29 = vpop.xlane.xlu0 %544  ;;  %v620_v30 = vpop.permute.xlu1 %619 }
 0x4b9   :  { %1499 = vpow2.f32 %v553_v28  ;;  %v549_v31 = vsub.f32 %v541_v19, %v545_v29  ;;  %1388 = vmatpush3.bf16.msra.mxu0 %v620_v30 }
 0x4ba   :  { %1399 = vmatprep.subr.bf16.mxu0 %v1695_v0 }
 0x4bb   :  { %v551_v32 = vmul.f32 1.442695, %v549_v31 }
 0x4bc   :  { %v668_v39 = vpop.permute.xlu1 %667 }
 0x4bd   :  { %1501 = vpow2.f32 %v551_v32  ;;  %v673_v49 = vsel %vm222_vm3, %v668_v39, 0 }
 0x4c0   :  { %v718_v43 = vpop.permute.xlu1 %717 }
 0x4c1   :  { %v723_v46 = vsel %vm222_vm3, %v718_v43, 0 }
 0x4c3   :  { %v1500_v33 = vpop.eup %1499 }
 0x4c4   :  { %v558_v34 = vsel %vm162_vm1, %v1500_v33, 0.0  ;;  %v716_v50 = vpop.permute.xlu1 %715 }
 0x4c5   :  { %559 = vadd.xlane.f32.xlu0 %v558_v34 }
 0x4c7   :  { %v1502_v35 = vpop.eup %1501 }
 0x4c8   :  { %v555_v36 = vsel %vm162_vm1, %v1502_v35, 0.0 }
 0x4c9   :  { %556 = vadd.xlane.f32.xlu0 %v555_v36 }
 0x4df   :  { %573 = vrot.lane.b32.xlu0 %v1836_v18, %s1699_s16 }
 0x4e3   :  { %665 = vrot.lane.b32.xlu0 %v1850_v26, %s1700_s19 }
 0x552   :  { %v560_v37 = vpop.xlane.xlu0 %559 }
 0x553   :  { %1503 = vrcp.f32 %v560_v37 }
 0x556   :  { %v557_v38 = vpop.xlane.xlu0 %556 }
 0x557   :  { %1505 = vrcp.f32 %v557_v38 }
 0x55a   :  { %v574_v40 = vpop.permute.xlu0 %573 }
 0x55b   :  { %1382 = vmatpush3.bf16.msra.mxu1 %v574_v40 }
 0x55c   :  { %1393 = vmatprep.subr.bf16.mxu1 %v1695_v0 }
 0x55d   :  { %v1504_v41 = vpop.eup %1503 }
 0x55e   :  { %v564_v42 = vmul.f32 %v1504_v41, %v1500_v33  ;;  %v666_v51 = vpop.permute.xlu0 %665 }
 0x560   :  { %570 = vst.msk [vmem:[#allocation11 + $0x28] sm:$0xff] %vm162_vm1, %v564_v42  ;;  %v572_v44 = vpack.c.bf16 %v564_v42, %v564_v42 }
 0x561   :  { %v1506_v45 = vpop.eup %1505 }
 0x562   :  { %v562_v47 = vmul.f32 %v1506_v45, %v1502_v35  ;;  %1390 = vmatmul.mubr.msk.bf16.vlgmr.msra.gmra.mrb[16].mxu0 %vm162_vm1, %v572_v44 }
 0x563   :  { %1400 = vmatpush3.bf16.xpose.msra.mxu0 %v723_v46  ;;  %1401 = vmatprep.mubr.msk.bf16.mxu0 %vm1696_vm0, %v1695_v0 }
 0x564   :  { %569 = vst.msk [vmem:[#allocation11 + $0x8] sm:$0xff] %vm162_vm1, %v562_v47  ;;  %v571_v48 = vpack.c.bf16 %v562_v47, %v562_v47  ;;  %1411 = vmatprep.subr.bf16.mxu0 %v1695_v0 }
 0x566   :  { %1384 = vmatmul.mubr.msk.bf16.vlgmr.msra.gmra.mrb[16].mxu1 %vm162_vm1, %v571_v48 }
 0x567   :  { %1394 = vmatpush3.bf16.xpose.msra.mxu1 %v673_v49  ;;  %1395 = vmatprep.mubr.msk.bf16.mxu1 %vm1696_vm0, %v1695_v0 }
 0x568   :  { %1405 = vmatprep.subr.bf16.mxu1 %v1695_v0 }
 0x56a   :  { %1402 = vmatmul.mubr.msk.bf16.vlgmr.msra.gmra.mrb[20].mxu0 %vm222_vm3, %v716_v50 }
 0x56b   :  { %1413 = vmatprep.mubr.msk.bf16.mxu0 %vm1696_vm0, %v1695_v0 }
 0x56e   :  { %1396 = vmatmul.mubr.msk.bf16.vlgmr.msra.gmra.mrb[20].mxu1 %vm222_vm3, %v666_v51 }
 0x56f   :  { %1407 = vmatprep.mubr.msk.bf16.mxu1 %vm1696_vm0, %v1695_v0 }
 0x635   :  { %v1930_v52 = vpop.f32.mrb[16].mxu0 }
 0x636   :  { %v1391_v53 = vpop.f32.mrb[17].mxu0 }
 0x637   :  { %v662_v54 = vpop.f32.mrb[18].mxu0 }
 0x638   :  { %v1392_v55 = vpop.f32.mrb[19].mxu0 }
 0x639   :  { %v1932_v56 = vpop.f32.mrb[16].mxu1 }
 0x63a   :  { %v1471_v57 = vpack.i.bf16 %v1930_v52, %v1932_v56  ;;  %v1385_v58 = vpop.f32.mrb[17].mxu1 }
 0x63b   :  { %v616_v59 = vpop.f32.mrb[18].mxu1 }
 0x63c   :  { %v1386_v60 = vpop.f32.mrb[19].mxu1 }
 0x63d   :  { %v759_v61 = vpop.f32.mrb[20].mxu0 }
 0x63e   :  { %v766_v62 = vmul.f32 0.35355338, %v759_v61  ;;  %v1403_v63 = vpop.f32.mrb[21].mxu0 }
 0x63f   :  { %v762_v1 = vpop.f32.mrb[22].mxu0 }
 0x640   :  { %791 = vst.msk [vmem:[#allocation13 + $0x30] sm:$0xff] %vm162_vm1, %v766_v62  ;;  %v1404_v3 = vpop.f32.mrb[23].mxu0  ;;  %v770_v4 = vsel %vm162_vm1, %v766_v62, -inf }
 0x641   :  { %v709_v5 = vpop.f32.mrb[20].mxu1  ;;  %771 = vmax.xlane.f32.xlu1 %v770_v4 }
 0x642   :  { %v765_v7 = vmul.f32 0.35355338, %v709_v5  ;;  %v1397_v8 = vpop.f32.mrb[21].mxu1 }
 0x643   :  { %v712_v9 = vpop.f32.mrb[22].mxu1 }
 0x644   :  { %790 = vst.msk [vmem:[#allocation13 + $0x10] sm:$0xff] %vm162_vm1, %v765_v7  ;;  %v1398_v10 = vpop.f32.mrb[23].mxu1  ;;  %v767_v11 = vsel %vm162_vm1, %v765_v7, -inf }
 0x645   :  { %768 = vmax.xlane.f32.xlu0 %v767_v11 }
 0x652   :  { %843 = vrot.lane.b32.xlu1 %v1834_v16, %s1701_s20 }
 0x656   :  { %891 = vrot.lane.b32.xlu1 %v1836_v18, %s1702_s0 }
 0x65a   :  { %941 = vrot.lane.b32.xlu1 %v1834_v16, %s1702_s0 }
 0x65e   :  { %939 = vrot.lane.b32.xlu1 %v1848_v24, %s1702_s0 }
 0x6ce   :  { %v772_v12 = vpop.xlane.xlu1 %771 }
 0x6cf   :  { %v774_v13 = vsub.f32 %v766_v62, %v772_v12 }
 0x6d1   :  { %v777_v14 = vmul.f32 1.442695, %v774_v13 }
 0x6d2   :  { %v769_v15 = vpop.xlane.xlu0 %768  ;;  %v844_v17 = vpop.permute.xlu1 %843 }
 0x6d3   :  { %1507 = vpow2.f32 %v777_v14  ;;  %v773_v19 = vsub.f32 %v765_v7, %v769_v15  ;;  %1412 = vmatpush3.bf16.msra.mxu0 %v844_v17 }
 0x6d4   :  { %1423 = vmatprep.subr.bf16.mxu0 %v1695_v0 }
 0x6d5   :  { %v775_v20 = vmul.f32 1.442695, %v773_v19 }
 0x6d6   :  { %v892_v28 = vpop.permute.xlu1 %891 }
 0x6d7   :  { %1509 = vpow2.f32 %v775_v20  ;;  %v897_v37 = vsel %vm222_vm3, %v892_v28, 0  ;;  %v1489_v20 = vld [vmem:[#allocation8] sm:$0xff]  }
 0x6da   :  { %v942_v32 = vpop.permute.xlu1 %941 }
 0x6db   :  { %v947_v35 = vsel %vm222_vm3, %v942_v32, 0 }
 0x6dd   :  { %v1508_v21 = vpop.eup %1507 }
 0x6de   :  { %v782_v22 = vsel %vm162_vm1, %v1508_v21, 0.0  ;;  %v940_v38 = vpop.permute.xlu1 %939 }
 0x6df   :  { %783 = vadd.xlane.f32.xlu0 %v782_v22 }
 0x6e1   :  { %v1510_v23 = vpop.eup %1509 }
 0x6e2   :  { %v779_v25 = vsel %vm162_vm1, %v1510_v23, 0.0 }
 0x6e3   :  { %780 = vadd.xlane.f32.xlu0 %v779_v25 }
 0x6f9   :  { %797 = vrot.lane.b32.xlu0 %v1836_v18, %s1701_s20 }
 0x6fd   :  { %889 = vrot.lane.b32.xlu0 %v1850_v26, %s1702_s0 }
 0x76c   :  { %v784_v24 = vpop.xlane.xlu0 %783 }
 0x76d   :  { %1511 = vrcp.f32 %v784_v24 }
 0x770   :  { %v781_v27 = vpop.xlane.xlu0 %780 }
 0x771   :  { %1513 = vrcp.f32 %v781_v27 }
 0x774   :  { %v798_v29 = vpop.permute.xlu0 %797 }
 0x775   :  { %1406 = vmatpush3.bf16.msra.mxu1 %v798_v29 }
 0x776   :  { %1417 = vmatprep.subr.bf16.mxu1 %v1695_v0 }
 0x777   :  { %v1512_v30 = vpop.eup %1511 }
 0x778   :  { %v788_v31 = vmul.f32 %v1512_v30, %v1508_v21  ;;  %v890_v39 = vpop.permute.xlu0 %889  ;;  %v1490_v21 = vld [vmem:[#allocation8 + $0x8] sm:$0xff]  }
 0x77a   :  { %794 = vst.msk [vmem:[#allocation11 + $0x30] sm:$0xff] %vm162_vm1, %v788_v31  ;;  %v796_v33 = vpack.c.bf16 %v788_v31, %v788_v31 }
 0x77b   :  { %v1514_v34 = vpop.eup %1513 }
 0x77c   :  { %v786_v36 = vmul.f32 %v1514_v34, %v1510_v23  ;;  %1414 = vmatmul.mubr.msk.bf16.vlgmr.msra.gmra.mrb[24].mxu0 %vm162_vm1, %v796_v33 }
 0x77d   :  { %1424 = vmatpush3.bf16.xpose.msra.mxu0 %v947_v35  ;;  %1425 = vmatprep.mubr.msk.bf16.mxu0 %vm1696_vm0, %v1695_v0 }
 0x77e   :  { %793 = vst.msk [vmem:[#allocation11 + $0x10] sm:$0xff] %vm162_vm1, %v786_v36  ;;  %v795_v26 = vpack.c.bf16 %v786_v36, %v786_v36  ;;  %1435 = vmatprep.subr.bf16.mxu0 %v1695_v0 }
 0x780   :  { %1408 = vmatmul.mubr.msk.bf16.vlgmr.msra.gmra.mrb[24].mxu1 %vm162_vm1, %v795_v26 }
 0x781   :  { %1418 = vmatpush3.bf16.xpose.msra.mxu1 %v897_v37  ;;  %1419 = vmatprep.mubr.msk.bf16.mxu1 %vm1696_vm0, %v1695_v0 }
 0x782   :  { %1429 = vmatprep.subr.bf16.mxu1 %v1695_v0 }
 0x784   :  { %1426 = vmatmul.mubr.msk.bf16.vlgmr.msra.gmra.mrb[28].mxu0 %vm222_vm3, %v940_v38 }
 0x785   :  { %1437 = vmatprep.mubr.msk.bf16.mxu0 %vm1696_vm0, %v1695_v0 }
 0x788   :  { %1420 = vmatmul.mubr.msk.bf16.vlgmr.msra.gmra.mrb[28].mxu1 %vm222_vm3, %v890_v39 }
 0x789   :  { %1431 = vmatprep.mubr.msk.bf16.mxu1 %vm1696_vm0, %v1695_v0 }
 0x84f   :  { %v883_v40 = vpop.f32.mrb[24].mxu0 }
 0x850   :  { %v1415_v41 = vpop.f32.mrb[25].mxu0 }
 0x851   :  { %v886_v42 = vpop.f32.mrb[26].mxu0 }
 0x852   :  { %v1416_v43 = vpop.f32.mrb[27].mxu0 }
 0x853   :  { %v837_v44 = vpop.f32.mrb[24].mxu1 }
 0x854   :  { %v1476_v45 = vpack.i.bf16 %v883_v40, %v837_v44  ;;  %v1409_v46 = vpop.f32.mrb[25].mxu1 }
 0x855   :  { %v840_v47 = vpop.f32.mrb[26].mxu1 }
 0x856   :  { %v1410_v48 = vpop.f32.mrb[27].mxu1 }
 0x857   :  { %v983_v49 = vpop.f32.mrb[28].mxu0 }
 0x858   :  { %v990_v50 = vmul.f32 0.35355338, %v983_v49  ;;  %v1427_v51 = vpop.f32.mrb[29].mxu0 }
 0x859   :  { %v986_v53 = vpop.f32.mrb[30].mxu0 }
 0x85a   :  { %1015 = vst.msk [vmem:[#allocation13 + $0x38] sm:$0xff] %vm162_vm1, %v990_v50  ;;  %v1428_v54 = vpop.f32.mrb[31].mxu0  ;;  %v994_v55 = vsel %vm162_vm1, %v990_v50, -inf }
 0x85b   :  { %v933_v58 = vpop.f32.mrb[28].mxu1  ;;  %995 = vmax.xlane.f32.xlu1 %v994_v55 }
 0x85c   :  { %v989_v59 = vmul.f32 0.35355338, %v933_v58  ;;  %v1421_v60 = vpop.f32.mrb[29].mxu1 }
 0x85d   :  { %v936_v61 = vpop.f32.mrb[30].mxu1 }
 0x85e   :  { %1014 = vst.msk [vmem:[#allocation13 + $0x18] sm:$0xff] %vm162_vm1, %v989_v59  ;;  %v1422_v62 = vpop.f32.mrb[31].mxu1  ;;  %v991_v63 = vsel %vm162_vm1, %v989_v59, -inf }
 0x85f   :  { %992 = vmax.xlane.f32.xlu0 %v991_v63 }
 0x86c   :  { %1067 = vrot.lane.b32.xlu1 %v1834_v16, %s1703_s30 }
 0x870   :  { %1472 = vrot.lane.b32.xlu1 %v1471_v57, %s1690_s18 }
 0x874   :  { %1477 = vrot.lane.b32.xlu1 %v1476_v45, %s1704_s21 }
 0x8e8   :  { %v996_v1 = vpop.xlane.xlu1 %995 }
 0x8e9   :  { %v998_v3 = vsub.f32 %v990_v50, %v996_v1 }
 0x8eb   :  { %v1001_v4 = vmul.f32 1.442695, %v998_v3 }
 0x8ec   :  { %v993_v5 = vpop.xlane.xlu0 %992  ;;  %v1068_v7 = vpop.permute.xlu1 %1067 }
 0x8ed   :  { %1515 = vpow2.f32 %v1001_v4  ;;  %v997_v8 = vsub.f32 %v989_v59, %v993_v5  ;;  %1436 = vmatpush3.bf16.msra.mxu0 %v1068_v7 }
 0x8ef   :  { %v999_v9 = vmul.f32 1.442695, %v997_v8 }
 0x8f0   :  { %v1473_v32 = vpop.permute.xlu1 %1472 }
 0x8f1   :  { %1517 = vpow2.f32 %v999_v9  ;;  %v1475_v34 = vunpack.i.h.bf16 %v1473_v32  ;;  %v1474_v35 = vunpack.i.l.bf16 %v1473_v32 }
 0x8f3   :  { %v1138_v37 = vsel %vm222_vm3, %v1894_v2, %v1475_v34  ;;  %v1137_v38 = vsel %vm222_vm3, %v1896_v6, %v1474_v35 }
 0x8f4   :  { %v1478_v33 = vpop.permute.xlu1 %1477 }
 0x8f5   :  { %v1480_v36 = vunpack.i.h.bf16 %v1478_v33  ;;  %v1479_v26 = vunpack.i.l.bf16 %v1478_v33 }
 0x8f7   :  { %v1516_v10 = vpop.eup %1515  ;;  %v1139_v41 = vsel %vm162_vm1, %v1137_v38, %v1479_v26  ;;  %v1140_v42 = vsel %vm162_vm1, %v1138_v37, %v1480_v36 }
 0x8f8   :  { %v1006_v16 = vsel %vm162_vm1, %v1516_v10, 0.0 }
 0x8f9   :  { %1007 = vadd.xlane.f32.xlu0 %v1006_v16 }
 0x8fb   :  { %v1518_v11 = vpop.eup %1517 }
 0x8fc   :  { %v1003_v52 = vsel %vm162_vm1, %v1518_v11, 0.0 }
 0x8fd   :  { %1004 = vadd.xlane.f32.xlu0 %v1003_v52 }
 0x913   :  { %1021 = vrot.lane.b32.xlu0 %v1836_v18, %s1703_s30 }
 0x986   :  { %v1008_v56 = vpop.xlane.xlu0 %1007 }
 0x987   :  { %1519 = vrcp.f32 %v1008_v56 }
 0x98a   :  { %v1005_v57 = vpop.xlane.xlu0 %1004 }
 0x98b   :  { %1521 = vrcp.f32 %v1005_v57 }
 0x98e   :  { %v1022_v12 = vpop.permute.xlu0 %1021 }
 0x98f   :  { %1430 = vmatpush3.bf16.msra.mxu1 %v1022_v12 }
 0x990   :  { %1441 = vmatprep.subr.bf16.mxu1 %v1695_v0 }
 0x991   :  { %v1520_v13 = vpop.eup %1519 }
 0x992   :  { %v1012_v14 = vmul.f32 %v1520_v13, %v1516_v10 }
 0x994   :  { %1018 = vst.msk [vmem:[#allocation11 + $0x38] sm:$0xff] %vm162_vm1, %v1012_v14  ;;  %v1020_v15 = vpack.c.bf16 %v1012_v14, %v1012_v14 }
 0x995   :  { %v1522_v17 = vpop.eup %1521 }
 0x996   :  { %v1010_v19 = vmul.f32 %v1522_v17, %v1518_v11  ;;  %1438 = vmatmul.mubr.msk.bf16.vlgmr.msra.gmra.mrb[32].mxu0 %vm162_vm1, %v1020_v15 }
 0x998   :  { %1017 = vst.msk [vmem:[#allocation11 + $0x18] sm:$0xff] %vm162_vm1, %v1010_v19  ;;  %v1019_v18 = vpack.c.bf16 %v1010_v19, %v1010_v19 }
 0x99a   :  { %1432 = vmatmul.mubr.msk.bf16.vlgmr.msra.gmra.mrb[32].mxu1 %vm162_vm1, %v1019_v18 }
 0x99b   :  { %1445 = vmatprep.mubr.msk.bf16.mxu1 %vm1696_vm0, %v1695_v0  ;;  %1442 = vmatpush3.bf16.msra.mxu1 %v1489_v20 }
 0x99c   :  { %1443 = vmatprep.subr.bf16.mxu1 %v1695_v0 }
 0x99f   :  { %1444 = vmatpush3.bf16.msra.mxu1 %v1490_v21 }
 0xa69   :  { %v1107_v22 = vpop.f32.mrb[32].mxu0 }
 0xa6a   :  { %v1439_v23 = vpop.f32.mrb[33].mxu0 }
 0xa6b   :  { %v1110_v25 = vpop.f32.mrb[34].mxu0 }
 0xa6c   :  { %v1440_v24 = vpop.f32.mrb[35].mxu0 }
 0xa6d   :  { %v1061_v27 = vpop.f32.mrb[32].mxu1 }
 0xa6e   :  { %v1481_v28 = vpack.i.bf16 %v1107_v22, %v1061_v27  ;;  %v1433_v29 = vpop.f32.mrb[33].mxu1 }
 0xa6f   :  { %v1064_v30 = vpop.f32.mrb[34].mxu1 }
 0xa70   :  { %v1434_v31 = vpop.f32.mrb[35].mxu1  ;;  %1482 = vrot.lane.b32.xlu0 %v1481_v28, %s1705_s22 }
 0xae2   :  { %v1483_v0 = vpop.permute.xlu0 %1482 }
 0xae3   :  { %v1485_v39 = vunpack.i.h.bf16 %v1483_v0  ;;  %v1484_v40 = vunpack.i.l.bf16 %v1483_v0 }
 0xae5   :  { %v1143_v43 = vsel %vm1141_vm4, %v1140_v42, %v1485_v39  ;;  %v1142_v44 = vsel %vm1141_vm4, %v1139_v41, %v1484_v40 }
 0xae6   :  { %v1144_v45 = vpack.c.bf16 %v1143_v43, %v1142_v44 }
 0xae8   :  { %1446 = vmatmul.mubr.msk.bf16.vlgmr.msra.gmra.mrb[36].mxu1 %vm109_vm2, %v1144_v45 }
 0xae9   :  { %1622 = shalt.err (!%p1619_p8)
}
 0xaea   :  { %s1623_s29 = scalar_lea.hbm %s2052_s7, 1024 }
 0xaeb   :  { %p1624_p9 = scmp.ne.s32.totalorder %s2052_s7, %s1623_s29  ;;  %p1627_p10 = scmp.lt.u32.totalorder %s1623_s29, %s2052_s7 }
 0xaed   :  { %p1629_p11 = pnand %p1627_p10, %p1624_p9 }
 0xaef   :  { %1632 = shalt.err (!%p1629_p11)
}
 0xaf0   :  { %1237 = dma.vmem_to_hbm [thread:$0]  %s1232_s24, 1024, %s2052_s7, [#allocation12], %s1689_s17, %s1689_s17, %s1690_s18  }
 0xaf1   :  { %s1707_s4 = smov [#allocation13]  }
 0xaf2   :  { %s1243_s12 = sshll.u32 %s1707_s4, 4  ;;  %s1244_s12 = int_to_ptr.vmem [resolvable:$true] %s1243_s12 }
 0xaf3   :  { %s1633_s13 = scalar_lea.vmem %s1244_s12, 1024  ;;  %p1638_p13 = scmp.lt.s32.totalorder %s1244_s12, %s1244_s12 }
 0xaf4   :  { %p1634_p12 = scmp.ne.s32.totalorder %s1244_s12, %s1633_s13  ;;  %p1639_p0 = scmp.lt.s32.totalorder %s1633_s13, %s1633_s13 }
 0xaf6   :  { %p1640_p1 = por %p1639_p0, %p1638_p13 }
 0xaf8   :  { %p1641_p2 = pnand %p1640_p1, %p1634_p12 }
 0xafa   :  { %1644 = shalt.err (!%p1641_p2)
}
 0xafb   :  { %s1645_s15 = scalar_lea.hbm %s2053_s8, 1024 }
 0xafc   :  { %p1646_p3 = scmp.ne.s32.totalorder %s2053_s8, %s1645_s15  ;;  %p1649_p4 = scmp.lt.u32.totalorder %s1645_s15, %s2053_s8 }
 0xafe   :  { %p1651_p5 = pnand %p1649_p4, %p1646_p3 }
 0xb00   :  { %1654 = shalt.err (!%p1651_p5)
}
 0xb01   :  { %1249 = dma.vmem_to_hbm [thread:$0]  %s1244_s12, 1024, %s2053_s8, [#allocation12], %s1689_s17, %s1689_s17, %s1690_s18  }
 0xb02   :  { %v1286_v2 = vld [vmem:[%s2050_s5] ss:$0 sm:$0xff]  ;;  %s1708_s23 = smov [#allocation10]  }
 0xb03   :  { %s1219_s24 = sshll.u32 %s1708_s23, 4  ;;  %s1220_s24 = int_to_ptr.vmem [resolvable:$true] %s1219_s24 }
 0xb04   :  { %s1655_s25 = scalar_lea.vmem %s1220_s24, 256  ;;  %p1660_p7 = scmp.lt.s32.totalorder %s1220_s24, %s1220_s24 }
 0xb05   :  { %p1656_p6 = scmp.ne.s32.totalorder %s1220_s24, %s1655_s25  ;;  %p1661_p8 = scmp.lt.s32.totalorder %s1655_s25, %s1655_s25 }
 0xb07   :  { %p1662_p9 = por %p1661_p8, %p1660_p7 }
 0xb09   :  { %p1663_p10 = pnand %p1662_p9, %p1656_p6 }
 0xbbb   :  { %v1205_v6 = vpop.f32.mrb[36].mxu1 }
 0xbbc   :  { %v1206_v46 = vadd.f32 %v1286_v2, %v1205_v6  ;;  %v1447_v47 = vpop.f32.mrb[37].mxu1 }
 0xbbd   :  { %v1208_v48 = vpop.f32.mrb[38].mxu1 }
 0xbbe   :  { %1212 = vst.msk [vmem:[#allocation10] sm:$0xff] %vm109_vm2, %v1206_v46  ;;  %v1209_v49 = vadd.f32 %v1286_v2, %v1208_v48  ;;  %v1448_v50 = vpop.f32.mrb[39].mxu1 }
 0xbc0   :  { %1213 = vst.msk [vmem:[#allocation10 + $0x8] sm:$0xff] %vm109_vm2, %v1209_v49 }
 0xbc1   :  { %1666 = shalt.err (!%p1663_p10)
}
 0xbc2   :  { %s1667_s26 = scalar_lea.hbm %s2051_s6, 256 }
 0xbc3   :  { %p1668_p11 = scmp.ne.s32.totalorder %s2051_s6, %s1667_s26  ;;  %p1671_p12 = scmp.lt.u32.totalorder %s1667_s26, %s2051_s6 }
 0xbc5   :  { %p1673_p13 = pnand %p1671_p12, %p1668_p11 }
 0xbc7   :  { %1676 = shalt.err (!%p1673_p13)
}
 0xbc8   :  { %1225 = dma.vmem_to_hbm [thread:$0]  %s1220_s24, 256, %s2051_s6, [#allocation4], %s1689_s17, %s1689_s17, %s1690_s18  }
 0xbc9   :  { %1683 = dma.done.wait [#allocation4], 256  }
 0xbca   :  { %1684 = vsyncadd [#allocation4], 4294967040 }
 0xbcb   :  { %1685 = dma.done.wait [#allocation12], 2048  }
 0xbcc   :  { %1686 = vsyncadd [#allocation12], 4294965248 }
 0xbcd   :  { %1259 = vsyncpa [#allocation3], 1 }
 0xbce   :  { %1260 = vsyncpa [#allocation6], 1 }
 0xbcf   :  { %1261 = vsyncpa [#allocation9], 1 }
 0xbd0   :  { %1262 = vsyncpa [#allocation4], 1 }
 0xbd1   :  { %1263 = vsyncpa [#allocation12], 1 }

</bundles_post_ra>
